<compile_context>
chip_gen: v6e
topology: v6e:2x2x1
jax: 0.10.0
libtpu: 0.0.40
codegen_flags: <defaults>
</compile_context>

<pallas_src>
import functools

import jax
import jax.numpy as jnp
from jax import lax
from jax.experimental import pallas as pl
from jax.experimental.pallas import tpu as pltpu


# ----------------------------------------------------------------------------
# cfg handling (glue). Original Darknet parses a .cfg file; here the cfg is an
# in-script string so no files are read.
# ----------------------------------------------------------------------------
CFG = """
[net]
height=16
width=16
channels=3

[convolutional]
batch_normalize=1
filters=8
size=3
stride=1
pad=1
activation=leaky

[convolutional]
batch_normalize=1
filters=16
size=3
stride=2
pad=1
activation=leaky

[convolutional]
batch_normalize=1
filters=16
size=3
stride=1
pad=1
activation=leaky

[shortcut]
from=-2
activation=linear

[convolutional]
filters=18
size=1
stride=1
pad=1
activation=linear

[yolo]
mask=0,1,2
anchors=10,13, 16,30, 33,23
classes=1
num=3

[route]
layers=-4

[convolutional]
batch_normalize=1
filters=8
size=1
stride=1
pad=1
activation=leaky

[upsample]
stride=2

[route]
layers=-1,-9

[maxpool]
size=2
stride=1

[convolutional]
filters=18
size=1
stride=1
pad=1
activation=linear

[yolo]
mask=0,1,2
anchors=10,13, 16,30, 33,23
classes=1
num=3
"""


def parse_cfg_string(cfg_str):
    lines = [l.strip() for l in cfg_str.split("\n")]
    lines = [l for l in lines if len(l) > 0 and l[0] != "#"]
    block, blocks = {}, []
    for line in lines:
        if line[0] == "[":
            if len(block) != 0:
                blocks.append(block)
                block = {}
            block["type"] = line[1:-1].rstrip()
        else:
            key, value = line.split("=")
            block[key.rstrip()] = value.lstrip()
    blocks.append(block)
    return blocks


def _round_up(x, m):
    return ((x + m - 1) // m) * m


# ----------------------------------------------------------------------------
# Pallas kernel: conv-as-matmul with BN already folded into W; epilogue does
# bias add (+ optional LeakyReLU). Output layout (Cout_pad, M) = lane-dense.
# ----------------------------------------------------------------------------
def _conv_mm_kernel(w_ref, p_ref, b_ref, o_ref, *, leaky):
    # w_ref: (Cp, Kp) bf16   folded weights
    # p_ref: (Kp, TM) bf16   im2col patches (transposed: K rows, M lanes)
    # b_ref: (Cp, 1)  f32    folded bias
    acc = jnp.dot(w_ref[...], p_ref[...], preferred_element_type=jnp.float32)
    y = acc + b_ref[...]
    if leaky:
        y = jnp.where(y > 0, y, 0.1 * y)
    o_ref[...] = y


def conv_matmul_pallas(w_pad, b_pad, patches, *, leaky):
    """w_pad:(Cp,Kp) bf16, b_pad:(Cp,1) f32, patches:(Kp,Mp) bf16 -> (Cp,Mp) f32."""
    Cp, Kp = w_pad.shape
    Mp = patches.shape[1]
    # One big lane block per layer (per-step overhead dominates at these sizes);
    # split in two "parallel" blocks when possible so v7x's 2 TCs both work.
    if Mp >= 256 and Mp % 256 == 0:
        TM = Mp // 2
    else:
        TM = Mp
    grid = (Mp // TM,)

    kernel = functools.partial(_conv_mm_kernel, leaky=leaky)
    return pl.pallas_call(
        kernel,
        out_shape=jax.ShapeDtypeStruct((Cp, Mp), jnp.float32),
        grid=grid,
        in_specs=[
            pl.BlockSpec((Cp, Kp), lambda i: (0, 0)),
            pl.BlockSpec((Kp, TM), lambda i: (0, i)),
            pl.BlockSpec((Cp, 1), lambda i: (0, 0)),
        ],
        out_specs=pl.BlockSpec((Cp, TM), lambda i: (0, i)),
        compiler_params=pltpu.CompilerParams(dimension_semantics=("parallel",)),
    )(w_pad, patches, b_pad)


# ----------------------------------------------------------------------------
# JAX glue ops. Internal activation layout everywhere is (C, N, H, W), i.e.
# NCHW with channels moved outermost so conv outputs reshape with no transpose.
# ----------------------------------------------------------------------------
def im2col_cnhw(x, k, stride, pad):
    """x (C,N,H,W) -> patches (Cin*k*k, N*Ho*Wo), row order (C, kh, kw) to match
    the (Cout, Cin*k*k) weight reshape."""
    C, N, H, W = x.shape
    Ho = (H + 2 * pad - k) // stride + 1
    Wo = (W + 2 * pad - k) // stride + 1
    xp = jnp.pad(x, ((0, 0), (0, 0), (pad, pad), (pad, pad))) if pad else x
    cols = []
    for i in range(k):
        for j in range(k):
            cols.append(xp[:, :, i:i + stride * Ho:stride, j:j + stride * Wo:stride])
    col = jnp.stack(cols, axis=1)                  # (C, k*k, N, Ho, Wo)
    col = col.reshape(C * k * k, N * Ho * Wo)      # (K, M)
    return col, Ho, Wo


def upsample_nearest2x(x):
    return jnp.repeat(jnp.repeat(x, 2, axis=2), 2, axis=3)


def maxpool(x, size, stride):
    return lax.reduce_window(x, -jnp.inf, lax.max,
                             (1, 1, size, size), (1, 1, stride, stride), "VALID")


def maxpool_stride1(x, size):
    # MaxPoolStride1: replicate-pad right/bottom by size-1, then MaxPool2d(size, size-1)
    pad = size - 1
    xp = jnp.pad(x, ((0, 0), (0, 0), (0, pad), (0, pad)), mode="edge")
    return lax.reduce_window(xp, -jnp.inf, lax.max,
                             (1, 1, size, size), (1, 1, pad, pad), "VALID")


def predict_transform_cnhw(pred, inp_dim, anchors, num_classes):
    """YOLO detection head transform; pred is (C, N, G, G) (== NCHW transposed)."""
    C, N, G, _ = pred.shape
    stride = inp_dim // G
    num_anchors = len(anchors)
    bbox_attrs = 5 + num_classes

    p = pred.reshape(C, N, G * G).transpose(1, 2, 0)          # (N, G*G, C)
    p = p.reshape(N, G * G * num_anchors, bbox_attrs)

    anchors_s = jnp.array([(a[0] / stride, a[1] / stride) for a in anchors],
                          dtype=jnp.float32)

    a_, b_ = jnp.meshgrid(jnp.arange(G), jnp.arange(G))       # 'xy' indexing
    x_off = a_.reshape(-1, 1).astype(jnp.float32)
    y_off = b_.reshape(-1, 1).astype(jnp.float32)
    xy_off = jnp.concatenate([x_off, y_off], axis=1)
    xy_off = jnp.tile(xy_off, (1, num_anchors)).reshape(-1, 2)[None]

    xy = jax.nn.sigmoid(p[:, :, 0:2]) + xy_off
    wh = jnp.exp(p[:, :, 2:4]) * jnp.tile(anchors_s, (G * G, 1))[None]
    obj = jax.nn.sigmoid(p[:, :, 4:5])
    cls = jax.nn.sigmoid(p[:, :, 5:5 + num_classes])
    box = jnp.concatenate([xy, wh], axis=2) * float(stride)
    return jnp.concatenate([box, obj, cls], axis=2)


# ----------------------------------------------------------------------------
# Darknet module (JAX/Pallas)
# ----------------------------------------------------------------------------
class DarknetPallas:
    def __init__(self, cfg_string, key):
        self.blocks = parse_cfg_string(cfg_string)
        self.net_info = self.blocks[0]
        self.layer_params = []
        self.yolo_anchors = {}

        prev_filters = int(self.net_info.get("channels", 3))
        output_filters = []
        for index, b in enumerate(self.blocks[1:]):
            t = b["type"]
            params = None
            filters = prev_filters
            if t == "convolutional":
                has_bn = ("batch_normalize" in b) and int(b["batch_normalize"])
                filters = int(b["filters"])
                k = int(b["size"])
                stride = int(b["stride"])
                pad = (k - 1) // 2 if int(b["pad"]) else 0
                lk = jax.random.fold_in(key, index)
                kw_, kb_, kg_, kbe_, km_, kv_ = jax.random.split(lk, 6)
                fan_in = prev_filters * k * k
                weight = jax.random.normal(
                    kw_, (filters, prev_filters, k, k), jnp.float32) * (1.0 / fan_in ** 0.5)

                if has_bn:
                    gamma = 1.0 + 0.1 * jax.random.normal(kg_, (filters,), jnp.float32)
                    beta = 0.1 * jax.random.normal(kbe_, (filters,), jnp.float32)
                    mean = 0.1 * jax.random.normal(km_, (filters,), jnp.float32)
                    var = 1.0 + 0.1 * jax.random.uniform(kv_, (filters,), jnp.float32)
                    # eval-mode BN folded into W and bias (eps matches nn.BatchNorm2d)
                    scale = gamma / jnp.sqrt(var + 1e-5)
                    bias = beta - mean * scale
                    weight = weight * scale[:, None, None, None]
                else:
                    bias = 0.1 * jax.random.normal(kb_, (filters,), jnp.float32)

                # Prepare MXU-ready padded layout ONCE (not per forward call).
                K = prev_filters * k * k
                Cp = _round_up(filters, 8)      # sublane dim: pad to 8 only
                Kp = _round_up(K, 128)          # contraction dim: pad to 128
                w2 = weight.reshape(filters, K)
                w_pad = jnp.zeros((Cp, Kp), jnp.float32).at[:filters, :K].set(w2)
                b_pad = jnp.zeros((Cp, 1), jnp.float32).at[:filters, 0].set(bias)
                params = {
                    "w_pad": w_pad.astype(jnp.bfloat16),
                    "b_pad": b_pad,
                    "Cout": filters,
                    "K": K,
                    "Kp": Kp,
                    "k": k,
                    "stride": stride,
                    "pad": pad,
                    "leaky": b["activation"] == "leaky",
                }
            elif t == "route":
                layers = [int(a) for a in b["layers"].split(",")]
                start = layers[0]
                end = layers[1] if len(layers) > 1 else 0
                if start > 0:
                    start -= index
                if end > 0:
                    end -= index
                if end < 0:
                    filters = output_filters[index + start] + output_filters[index + end]
                else:
                    filters = output_filters[index + start]
            elif t == "yolo":
                mask = [int(m) for m in b["mask"].split(",")]
                anc = [int(a) for a in b["anchors"].split(",")]
                anc = [(anc[i], anc[i + 1]) for i in range(0, len(anc), 2)]
                self.yolo_anchors[index] = [anc[m] for m in mask]
            # shortcut / upsample / maxpool keep previous filter count
            self.layer_params.append(params)
            prev_filters = filters
            output_filters.append(filters)

    def _conv_forward(self, i, x):
        p = self.layer_params[i]
        N = x.shape[1]
        patches, Ho, Wo = im2col_cnhw(x, p["k"], p["stride"], p["pad"])
        K, M = patches.shape
        Kp = p["Kp"]
        Mp = _round_up(M, 128)
        if (Kp, Mp) != (K, M):
            patches = jnp.pad(patches, ((0, Kp - K), (0, Mp - M)))
        patches = patches.astype(jnp.bfloat16)

        out2d = conv_matmul_pallas(p["w_pad"], p["b_pad"], patches, leaky=p["leaky"])
        out2d = out2d[:p["Cout"], :M]
        return out2d.reshape(p["Cout"], N, Ho, Wo)   # (C, N, H, W): no transpose

    def forward(self, x_nchw):
        # convert external NCHW once to the internal (C, N, H, W) layout
        x = jnp.transpose(x_nchw, (1, 0, 2, 3))
        modules = self.blocks[1:]
        outputs = {}
        detections = None
        for i, module in enumerate(modules):
            t = module["type"]
            if t == "convolutional":
                x = self._conv_forward(i, x)
            elif t == "upsample":
                x = upsample_nearest2x(x)
            elif t == "maxpool":
                stride = int(module["stride"])
                size = int(module["size"])
                x = maxpool(x, size, stride) if stride != 1 else maxpool_stride1(x, size)
            elif t == "route":
                layers = [int(a) for a in module["layers"].split(",")]
                if layers[0] > 0:
                    layers[0] -= i
                if len(layers) == 1:
                    x = outputs[i + layers[0]]
                else:
                    if layers[1] > 0:
                        layers[1] -= i
                    x = jnp.concatenate([outputs[i + layers[0]],
                                         outputs[i + layers[1]]], axis=0)  # channel axis
            elif t == "shortcut":
                frm = int(module["from"])
                # tiny residual add: plain XLA op (fused), no separate kernel launch
                x = outputs[i - 1] + outputs[i + frm]
            elif t == "yolo":
                anchors = self.yolo_anchors[i]
                inp_dim = int(self.net_info["height"])
                num_classes = int(module["classes"])
                x = predict_transform_cnhw(x, inp_dim, anchors, num_classes)
                detections = x if detections is None else jnp.concatenate(
                    [detections, x], axis=1)
            outputs[i] = x
        return detections


if __name__ == "__main__":
    key = jax.random.PRNGKey(0)
    k_params, k_input = jax.random.split(key)

    net = DarknetPallas(CFG, k_params)

    # Input: batch=2, channels=3 (Darknet default), 16x16 spatial (cfg height/width).
    x = jax.random.normal(k_input, (2, 3, 16, 16), dtype=jnp.float32)

    fwd = jax.jit(net.forward)
    detections = jax.block_until_ready(fwd(x))

    # 3 anchors * (8*8 + 16*16) grid cells = 960 detections, 5+1 attrs each.
    assert detections.shape == (2, 960, 6), detections.shape
    assert bool(jnp.all(jnp.isfinite(detections)))
    print("KERNEL_OK")
</pallas_src>

<mosaic_0001>
module attributes {stable_mosaic.version = 11 : i64} {
  func.func @_conv_mm_kernel(%arg0: i32, %arg1: memref<8x128xbf16, #tpu.memory_space<vmem>>, %arg2: memref<128x256xbf16, #tpu.memory_space<vmem>>, %arg3: memref<8x1xf32, #tpu.memory_space<vmem>>, %arg4: memref<8x256xf32, #tpu.memory_space<vmem>>) attributes {dimension_semantics = [#tpu.dimension_semantics<parallel>], iteration_bounds = array<i64: 2>, scalar_prefetch = 0 : i64, scratch_operands = 0 : i64, tpu.core_type = #tpu.core_type<tc>, window_params = [{pipeline_mode = #tpu.pipeline_mode<synchronous>, transform_indices = @transform_0, window_bounds = array<i64: 8, 128>}, {transform_indices = @transform_1, window_bounds = array<i64: 128, 256>}, {pipeline_mode = #tpu.pipeline_mode<synchronous>, transform_indices = @transform_2, window_bounds = array<i64: 8, 1>}, {transform_indices = @transform_3, window_bounds = array<i64: 8, 256>}]} {
    %c0 = arith.constant 0 : index
    %c0_0 = arith.constant 0 : index
    %0 = vector.load %arg1[%c0, %c0_0] : memref<8x128xbf16, #tpu.memory_space<vmem>>, vector<8x128xbf16>
    %c0_1 = arith.constant 0 : index
    %c0_2 = arith.constant 0 : index
    %1 = vector.load %arg2[%c0_1, %c0_2] : memref<128x256xbf16, #tpu.memory_space<vmem>>, vector<128x256xbf16>
    %cst = arith.constant dense<0.000000e+00> : vector<8x256xf32>
    %2 = tpu.matmul %0, %1, %cst {dimension_numbers = #tpu.dot_dimension_numbers<[1], [0], [0], [1], [0, 0, 1, 1], [], []>} : vector<8x128xbf16>, vector<128x256xbf16>, vector<8x256xf32> -> vector<8x256xf32>
    %c0_3 = arith.constant 0 : index
    %c0_4 = arith.constant 0 : index
    %3 = vector.load %arg3[%c0_3, %c0_4] : memref<8x1xf32, #tpu.memory_space<vmem>>, vector<8x1xf32>
    %4 = vector.broadcast %3 : vector<8x1xf32> to vector<8x256xf32>
    %5 = arith.addf %2, %4 : vector<8x256xf32>
    %cst_5 = arith.constant 0.000000e+00 : f32
    %6 = vector.broadcast %cst_5 : f32 to vector<8x256xf32>
    %7 = arith.cmpf ogt, %5, %6 : vector<8x256xf32>
    %cst_6 = arith.constant 1.000000e-01 : f32
    %8 = vector.broadcast %cst_6 : f32 to vector<8x256xf32>
    %9 = arith.mulf %8, %5 : vector<8x256xf32>
    %10 = arith.select %7, %5, %9 : vector<8x256xi1>, vector<8x256xf32>
    %c0_7 = arith.constant 0 : index
    %c0_8 = arith.constant 0 : index
    %11 = vector.load %arg4[%c0_7, %c0_8] : memref<8x256xf32, #tpu.memory_space<vmem>>, vector<8x256xf32>
    tpu.vector_store %arg4[%c0_7, %c0_8], %10 {strides = array<i32>} : memref<8x256xf32, #tpu.memory_space<vmem>>, vector<8x256xf32>,
    return
  }
  func.func @transform_0(%arg0: i32) -> (i32, i32) {
    %c0_i32 = arith.constant 0 : i32
    %c0_i32_0 = arith.constant 0 : i32
    %c0_i32_1 = arith.constant 0 : i32
    return %c0_i32, %c0_i32_0 : i32, i32
  }
  func.func @transform_1(%arg0: i32) -> (i32, i32) {
    %c0_i32 = arith.constant 0 : i32
    %c0_i32_0 = arith.constant 0 : i32
    return %c0_i32, %arg0 : i32, i32
  }
  func.func @transform_2(%arg0: i32) -> (i32, i32) {
    %c0_i32 = arith.constant 0 : i32
    %c0_i32_0 = arith.constant 0 : i32
    %c0_i32_1 = arith.constant 0 : i32
    return %c0_i32, %c0_i32_0 : i32, i32
  }
  func.func @transform_3(%arg0: i32) -> (i32, i32) {
    %c0_i32 = arith.constant 0 : i32
    %c0_i32_0 = arith.constant 0 : i32
    return %c0_i32, %arg0 : i32, i32
  }
}

module attributes {stable_mosaic.version = 11 : i64} {
  func.func @_conv_mm_kernel(%arg0: i32, %arg1: memref<16x128xbf16, #tpu.memory_space<vmem>>, %arg2: memref<128x128xbf16, #tpu.memory_space<vmem>>, %arg3: memref<16x1xf32, #tpu.memory_space<vmem>>, %arg4: memref<16x128xf32, #tpu.memory_space<vmem>>) attributes {dimension_semantics = [#tpu.dimension_semantics<parallel>], iteration_bounds = array<i64: 1>, scalar_prefetch = 0 : i64, scratch_operands = 0 : i64, tpu.core_type = #tpu.core_type<tc>, window_params = [{pipeline_mode = #tpu.pipeline_mode<synchronous>, transform_indices = @transform_0, window_bounds = array<i64: 16, 128>}, {transform_indices = @transform_1, window_bounds = array<i64: 128, 128>}, {pipeline_mode = #tpu.pipeline_mode<synchronous>, transform_indices = @transform_2, window_bounds = array<i64: 16, 1>}, {transform_indices = @transform_3, window_bounds = array<i64: 16, 128>}]} {
    %c0 = arith.constant 0 : index
    %c0_0 = arith.constant 0 : index
    %0 = vector.load %arg1[%c0, %c0_0] : memref<16x128xbf16, #tpu.memory_space<vmem>>, vector<16x128xbf16>
    %c0_1 = arith.constant 0 : index
    %c0_2 = arith.constant 0 : index
    %1 = vector.load %arg2[%c0_1, %c0_2] : memref<128x128xbf16, #tpu.memory_space<vmem>>, vector<128x128xbf16>
    %cst = arith.constant dense<0.000000e+00> : vector<16x128xf32>
    %2 = tpu.matmul %0, %1, %cst {dimension_numbers = #tpu.dot_dimension_numbers<[1], [0], [0], [1], [0, 0, 1, 1], [], []>} : vector<16x128xbf16>, vector<128x128xbf16>, vector<16x128xf32> -> vector<16x128xf32>
    %c0_3 = arith.constant 0 : index
    %c0_4 = arith.constant 0 : index
    %3 = vector.load %arg3[%c0_3, %c0_4] : memref<16x1xf32, #tpu.memory_space<vmem>>, vector<16x1xf32>
    %4 = vector.broadcast %3 : vector<16x1xf32> to vector<16x128xf32>
    %5 = arith.addf %2, %4 : vector<16x128xf32>
    %cst_5 = arith.constant 0.000000e+00 : f32
    %6 = vector.broadcast %cst_5 : f32 to vector<16x128xf32>
    %7 = arith.cmpf ogt, %5, %6 : vector<16x128xf32>
    %cst_6 = arith.constant 1.000000e-01 : f32
    %8 = vector.broadcast %cst_6 : f32 to vector<16x128xf32>
    %9 = arith.mulf %8, %5 : vector<16x128xf32>
    %10 = arith.select %7, %5, %9 : vector<16x128xi1>, vector<16x128xf32>
    %c0_7 = arith.constant 0 : index
    %c0_8 = arith.constant 0 : index
    %11 = vector.load %arg4[%c0_7, %c0_8] : memref<16x128xf32, #tpu.memory_space<vmem>>, vector<16x128xf32>
    tpu.vector_store %arg4[%c0_7, %c0_8], %10 {strides = array<i32>} : memref<16x128xf32, #tpu.memory_space<vmem>>, vector<16x128xf32>,
    return
  }
  func.func @transform_0(%arg0: i32) -> (i32, i32) {
    %c0_i32 = arith.constant 0 : i32
    %c0_i32_0 = arith.constant 0 : i32
    %c0_i32_1 = arith.constant 0 : i32
    return %c0_i32, %c0_i32_0 : i32, i32
  }
  func.func @transform_1(%arg0: i32) -> (i32, i32) {
    %c0_i32 = arith.constant 0 : i32
    %c0_i32_0 = arith.constant 0 : i32
    return %c0_i32, %arg0 : i32, i32
  }
  func.func @transform_2(%arg0: i32) -> (i32, i32) {
    %c0_i32 = arith.constant 0 : i32
    %c0_i32_0 = arith.constant 0 : i32
    %c0_i32_1 = arith.constant 0 : i32
    return %c0_i32, %c0_i32_0 : i32, i32
  }
  func.func @transform_3(%arg0: i32) -> (i32, i32) {
    %c0_i32 = arith.constant 0 : i32
    %c0_i32_0 = arith.constant 0 : i32
    return %c0_i32, %arg0 : i32, i32
  }
}

module attributes {stable_mosaic.version = 11 : i64} {
  func.func @_conv_mm_kernel(%arg0: i32, %arg1: memref<16x256xbf16, #tpu.memory_space<vmem>>, %arg2: memref<256x128xbf16, #tpu.memory_space<vmem>>, %arg3: memref<16x1xf32, #tpu.memory_space<vmem>>, %arg4: memref<16x128xf32, #tpu.memory_space<vmem>>) attributes {dimension_semantics = [#tpu.dimension_semantics<parallel>], iteration_bounds = array<i64: 1>, scalar_prefetch = 0 : i64, scratch_operands = 0 : i64, tpu.core_type = #tpu.core_type<tc>, window_params = [{pipeline_mode = #tpu.pipeline_mode<synchronous>, transform_indices = @transform_0, window_bounds = array<i64: 16, 256>}, {transform_indices = @transform_1, window_bounds = array<i64: 256, 128>}, {pipeline_mode = #tpu.pipeline_mode<synchronous>, transform_indices = @transform_2, window_bounds = array<i64: 16, 1>}, {transform_indices = @transform_3, window_bounds = array<i64: 16, 128>}]} {
    %c0 = arith.constant 0 : index
    %c0_0 = arith.constant 0 : index
    %0 = vector.load %arg1[%c0, %c0_0] : memref<16x256xbf16, #tpu.memory_space<vmem>>, vector<16x256xbf16>
    %c0_1 = arith.constant 0 : index
    %c0_2 = arith.constant 0 : index
    %1 = vector.load %arg2[%c0_1, %c0_2] : memref<256x128xbf16, #tpu.memory_space<vmem>>, vector<256x128xbf16>
    %cst = arith.constant dense<0.000000e+00> : vector<16x128xf32>
    %2 = tpu.matmul %0, %1, %cst {dimension_numbers = #tpu.dot_dimension_numbers<[1], [0], [0], [1], [0, 0, 1, 1], [], []>} : vector<16x256xbf16>, vector<256x128xbf16>, vector<16x128xf32> -> vector<16x128xf32>
    %c0_3 = arith.constant 0 : index
    %c0_4 = arith.constant 0 : index
    %3 = vector.load %arg3[%c0_3, %c0_4] : memref<16x1xf32, #tpu.memory_space<vmem>>, vector<16x1xf32>
    %4 = vector.broadcast %3 : vector<16x1xf32> to vector<16x128xf32>
    %5 = arith.addf %2, %4 : vector<16x128xf32>
    %cst_5 = arith.constant 0.000000e+00 : f32
    %6 = vector.broadcast %cst_5 : f32 to vector<16x128xf32>
    %7 = arith.cmpf ogt, %5, %6 : vector<16x128xf32>
    %cst_6 = arith.constant 1.000000e-01 : f32
    %8 = vector.broadcast %cst_6 : f32 to vector<16x128xf32>
    %9 = arith.mulf %8, %5 : vector<16x128xf32>
    %10 = arith.select %7, %5, %9 : vector<16x128xi1>, vector<16x128xf32>
    %c0_7 = arith.constant 0 : index
    %c0_8 = arith.constant 0 : index
    %11 = vector.load %arg4[%c0_7, %c0_8] : memref<16x128xf32, #tpu.memory_space<vmem>>, vector<16x128xf32>
    tpu.vector_store %arg4[%c0_7, %c0_8], %10 {strides = array<i32>} : memref<16x128xf32, #tpu.memory_space<vmem>>, vector<16x128xf32>,
    return
  }
  func.func @transform_0(%arg0: i32) -> (i32, i32) {
    %c0_i32 = arith.constant 0 : i32
    %c0_i32_0 = arith.constant 0 : i32
    %c0_i32_1 = arith.constant 0 : i32
    return %c0_i32, %c0_i32_0 : i32, i32
  }
  func.func @transform_1(%arg0: i32) -> (i32, i32) {
    %c0_i32 = arith.constant 0 : i32
    %c0_i32_0 = arith.constant 0 : i32
    return %c0_i32, %arg0 : i32, i32
  }
  func.func @transform_2(%arg0: i32) -> (i32, i32) {
    %c0_i32 = arith.constant 0 : i32
    %c0_i32_0 = arith.constant 0 : i32
    %c0_i32_1 = arith.constant 0 : i32
    return %c0_i32, %c0_i32_0 : i32, i32
  }
  func.func @transform_3(%arg0: i32) -> (i32, i32) {
    %c0_i32 = arith.constant 0 : i32
    %c0_i32_0 = arith.constant 0 : i32
    return %c0_i32, %arg0 : i32, i32
  }
}

module attributes {stable_mosaic.version = 11 : i64} {
  func.func @_conv_mm_kernel(%arg0: i32, %arg1: memref<8x128xbf16, #tpu.memory_space<vmem>>, %arg2: memref<128x128xbf16, #tpu.memory_space<vmem>>, %arg3: memref<8x1xf32, #tpu.memory_space<vmem>>, %arg4: memref<8x128xf32, #tpu.memory_space<vmem>>) attributes {dimension_semantics = [#tpu.dimension_semantics<parallel>], iteration_bounds = array<i64: 1>, scalar_prefetch = 0 : i64, scratch_operands = 0 : i64, tpu.core_type = #tpu.core_type<tc>, window_params = [{pipeline_mode = #tpu.pipeline_mode<synchronous>, transform_indices = @transform_0, window_bounds = array<i64: 8, 128>}, {transform_indices = @transform_1, window_bounds = array<i64: 128, 128>}, {pipeline_mode = #tpu.pipeline_mode<synchronous>, transform_indices = @transform_2, window_bounds = array<i64: 8, 1>}, {transform_indices = @transform_3, window_bounds = array<i64: 8, 128>}]} {
    %c0 = arith.constant 0 : index
    %c0_0 = arith.constant 0 : index
    %0 = vector.load %arg1[%c0, %c0_0] : memref<8x128xbf16, #tpu.memory_space<vmem>>, vector<8x128xbf16>
    %c0_1 = arith.constant 0 : index
    %c0_2 = arith.constant 0 : index
    %1 = vector.load %arg2[%c0_1, %c0_2] : memref<128x128xbf16, #tpu.memory_space<vmem>>, vector<128x128xbf16>
    %cst = arith.constant dense<0.000000e+00> : vector<8x128xf32>
    %2 = tpu.matmul %0, %1, %cst {dimension_numbers = #tpu.dot_dimension_numbers<[1], [0], [0], [1], [0, 0, 1, 1], [], []>} : vector<8x128xbf16>, vector<128x128xbf16>, vector<8x128xf32> -> vector<8x128xf32>
    %c0_3 = arith.constant 0 : index
    %c0_4 = arith.constant 0 : index
    %3 = vector.load %arg3[%c0_3, %c0_4] : memref<8x1xf32, #tpu.memory_space<vmem>>, vector<8x1xf32>
    %4 = vector.broadcast %3 : vector<8x1xf32> to vector<8x128xf32>
    %5 = arith.addf %2, %4 : vector<8x128xf32>
    %cst_5 = arith.constant 0.000000e+00 : f32
    %6 = vector.broadcast %cst_5 : f32 to vector<8x128xf32>
    %7 = arith.cmpf ogt, %5, %6 : vector<8x128xf32>
    %cst_6 = arith.constant 1.000000e-01 : f32
    %8 = vector.broadcast %cst_6 : f32 to vector<8x128xf32>
    %9 = arith.mulf %8, %5 : vector<8x128xf32>
    %10 = arith.select %7, %5, %9 : vector<8x128xi1>, vector<8x128xf32>
    %c0_7 = arith.constant 0 : index
    %c0_8 = arith.constant 0 : index
    %11 = vector.load %arg4[%c0_7, %c0_8] : memref<8x128xf32, #tpu.memory_space<vmem>>, vector<8x128xf32>
    tpu.vector_store %arg4[%c0_7, %c0_8], %10 {strides = array<i32>} : memref<8x128xf32, #tpu.memory_space<vmem>>, vector<8x128xf32>,
    return
  }
  func.func @transform_0(%arg0: i32) -> (i32, i32) {
    %c0_i32 = arith.constant 0 : i32
    %c0_i32_0 = arith.constant 0 : i32
    %c0_i32_1 = arith.constant 0 : i32
    return %c0_i32, %c0_i32_0 : i32, i32
  }
  func.func @transform_1(%arg0: i32) -> (i32, i32) {
    %c0_i32 = arith.constant 0 : i32
    %c0_i32_0 = arith.constant 0 : i32
    return %c0_i32, %arg0 : i32, i32
  }
  func.func @transform_2(%arg0: i32) -> (i32, i32) {
    %c0_i32 = arith.constant 0 : i32
    %c0_i32_0 = arith.constant 0 : i32
    %c0_i32_1 = arith.constant 0 : i32
    return %c0_i32, %c0_i32_0 : i32, i32
  }
  func.func @transform_3(%arg0: i32) -> (i32, i32) {
    %c0_i32 = arith.constant 0 : i32
    %c0_i32_0 = arith.constant 0 : i32
    return %c0_i32, %arg0 : i32, i32
  }
}

module attributes {stable_mosaic.version = 11 : i64} {
  func.func @_conv_mm_kernel(%arg0: i32, %arg1: memref<24x128xbf16, #tpu.memory_space<vmem>>, %arg2: memref<128x256xbf16, #tpu.memory_space<vmem>>, %arg3: memref<24x1xf32, #tpu.memory_space<vmem>>, %arg4: memref<24x256xf32, #tpu.memory_space<vmem>>) attributes {dimension_semantics = [#tpu.dimension_semantics<parallel>], iteration_bounds = array<i64: 2>, scalar_prefetch = 0 : i64, scratch_operands = 0 : i64, tpu.core_type = #tpu.core_type<tc>, window_params = [{pipeline_mode = #tpu.pipeline_mode<synchronous>, transform_indices = @transform_0, window_bounds = array<i64: 24, 128>}, {transform_indices = @transform_1, window_bounds = array<i64: 128, 256>}, {pipeline_mode = #tpu.pipeline_mode<synchronous>, transform_indices = @transform_2, window_bounds = array<i64: 24, 1>}, {transform_indices = @transform_3, window_bounds = array<i64: 24, 256>}]} {
    %c0 = arith.constant 0 : index
    %c0_0 = arith.constant 0 : index
    %0 = vector.load %arg1[%c0, %c0_0] : memref<24x128xbf16, #tpu.memory_space<vmem>>, vector<24x128xbf16>
    %c0_1 = arith.constant 0 : index
    %c0_2 = arith.constant 0 : index
    %1 = vector.load %arg2[%c0_1, %c0_2] : memref<128x256xbf16, #tpu.memory_space<vmem>>, vector<128x256xbf16>
    %cst = arith.constant dense<0.000000e+00> : vector<24x256xf32>
    %2 = tpu.matmul %0, %1, %cst {dimension_numbers = #tpu.dot_dimension_numbers<[1], [0], [0], [1], [0, 0, 1, 1], [], []>} : vector<24x128xbf16>, vector<128x256xbf16>, vector<24x256xf32> -> vector<24x256xf32>
    %c0_3 = arith.constant 0 : index
    %c0_4 = arith.constant 0 : index
    %3 = vector.load %arg3[%c0_3, %c0_4] : memref<24x1xf32, #tpu.memory_space<vmem>>, vector<24x1xf32>
    %4 = vector.broadcast %3 : vector<24x1xf32> to vector<24x256xf32>
    %5 = arith.addf %2, %4 : vector<24x256xf32>
    %c0_5 = arith.constant 0 : index
    %c0_6 = arith.constant 0 : index
    %6 = vector.load %arg4[%c0_5, %c0_6] : memref<24x256xf32, #tpu.memory_space<vmem>>, vector<24x256xf32>
    tpu.vector_store %arg4[%c0_5, %c0_6], %5 {strides = array<i32>} : memref<24x256xf32, #tpu.memory_space<vmem>>, vector<24x256xf32>,
    return
  }
  func.func @transform_0(%arg0: i32) -> (i32, i32) {
    %c0_i32 = arith.constant 0 : i32
    %c0_i32_0 = arith.constant 0 : i32
    %c0_i32_1 = arith.constant 0 : i32
    return %c0_i32, %c0_i32_0 : i32, i32
  }
  func.func @transform_1(%arg0: i32) -> (i32, i32) {
    %c0_i32 = arith.constant 0 : i32
    %c0_i32_0 = arith.constant 0 : i32
    return %c0_i32, %arg0 : i32, i32
  }
  func.func @transform_2(%arg0: i32) -> (i32, i32) {
    %c0_i32 = arith.constant 0 : i32
    %c0_i32_0 = arith.constant 0 : i32
    %c0_i32_1 = arith.constant 0 : i32
    return %c0_i32, %c0_i32_0 : i32, i32
  }
  func.func @transform_3(%arg0: i32) -> (i32, i32) {
    %c0_i32 = arith.constant 0 : i32
    %c0_i32_0 = arith.constant 0 : i32
    return %c0_i32, %arg0 : i32, i32
  }
}

module attributes {stable_mosaic.version = 11 : i64} {
  func.func @_conv_mm_kernel(%arg0: i32, %arg1: memref<24x128xbf16, #tpu.memory_space<vmem>>, %arg2: memref<128x128xbf16, #tpu.memory_space<vmem>>, %arg3: memref<24x1xf32, #tpu.memory_space<vmem>>, %arg4: memref<24x128xf32, #tpu.memory_space<vmem>>) attributes {dimension_semantics = [#tpu.dimension_semantics<parallel>], iteration_bounds = array<i64: 1>, scalar_prefetch = 0 : i64, scratch_operands = 0 : i64, tpu.core_type = #tpu.core_type<tc>, window_params = [{pipeline_mode = #tpu.pipeline_mode<synchronous>, transform_indices = @transform_0, window_bounds = array<i64: 24, 128>}, {transform_indices = @transform_1, window_bounds = array<i64: 128, 128>}, {pipeline_mode = #tpu.pipeline_mode<synchronous>, transform_indices = @transform_2, window_bounds = array<i64: 24, 1>}, {transform_indices = @transform_3, window_bounds = array<i64: 24, 128>}]} {
    %c0 = arith.constant 0 : index
    %c0_0 = arith.constant 0 : index
    %0 = vector.load %arg1[%c0, %c0_0] : memref<24x128xbf16, #tpu.memory_space<vmem>>, vector<24x128xbf16>
    %c0_1 = arith.constant 0 : index
    %c0_2 = arith.constant 0 : index
    %1 = vector.load %arg2[%c0_1, %c0_2] : memref<128x128xbf16, #tpu.memory_space<vmem>>, vector<128x128xbf16>
    %cst = arith.constant dense<0.000000e+00> : vector<24x128xf32>
    %2 = tpu.matmul %0, %1, %cst {dimension_numbers = #tpu.dot_dimension_numbers<[1], [0], [0], [1], [0, 0, 1, 1], [], []>} : vector<24x128xbf16>, vector<128x128xbf16>, vector<24x128xf32> -> vector<24x128xf32>
    %c0_3 = arith.constant 0 : index
    %c0_4 = arith.constant 0 : index
    %3 = vector.load %arg3[%c0_3, %c0_4] : memref<24x1xf32, #tpu.memory_space<vmem>>, vector<24x1xf32>
    %4 = vector.broadcast %3 : vector<24x1xf32> to vector<24x128xf32>
    %5 = arith.addf %2, %4 : vector<24x128xf32>
    %c0_5 = arith.constant 0 : index
    %c0_6 = arith.constant 0 : index
    %6 = vector.load %arg4[%c0_5, %c0_6] : memref<24x128xf32, #tpu.memory_space<vmem>>, vector<24x128xf32>
    tpu.vector_store %arg4[%c0_5, %c0_6], %5 {strides = array<i32>} : memref<24x128xf32, #tpu.memory_space<vmem>>, vector<24x128xf32>,
    return
  }
  func.func @transform_0(%arg0: i32) -> (i32, i32) {
    %c0_i32 = arith.constant 0 : i32
    %c0_i32_0 = arith.constant 0 : i32
    %c0_i32_1 = arith.constant 0 : i32
    return %c0_i32, %c0_i32_0 : i32, i32
  }
  func.func @transform_1(%arg0: i32) -> (i32, i32) {
    %c0_i32 = arith.constant 0 : i32
    %c0_i32_0 = arith.constant 0 : i32
    return %c0_i32, %arg0 : i32, i32
  }
  func.func @transform_2(%arg0: i32) -> (i32, i32) {
    %c0_i32 = arith.constant 0 : i32
    %c0_i32_0 = arith.constant 0 : i32
    %c0_i32_1 = arith.constant 0 : i32
    return %c0_i32, %c0_i32_0 : i32, i32
  }
  func.func @transform_3(%arg0: i32) -> (i32, i32) {
    %c0_i32 = arith.constant 0 : i32
    %c0_i32_0 = arith.constant 0 : i32
    return %c0_i32, %arg0 : i32, i32
  }
}

</mosaic_0001>

<bundles_post_ra>
// kernel: forward.6
= control target key start
LH: loop header
LB: loop body
LE: loop exit
PB: predicated region body
PF: predicated region fallthrough
CT: control target
= control target key end

     0   :  { %s609_s12 = smov 0   ;;  %s611_s13 = smov 0   ;;  %s685_s0 = inlined_call_operand.vmem [shape: bf16[8,128], index: 0, kind: input, shape index: {}]   ;;  %s686_s1 = inlined_call_operand.vmem [shape: bf16[128,512], index: 1, kind: input, shape index: {}]   ;;  %s687_s2 = inlined_call_operand.vmem [shape: f32[8,1], index: 2, kind: input, shape index: {}]   ;;  %s688_s3 = inlined_call_operand.vmem [shape: f32[8,512], index: 3, kind: output, shape index: {}]  }
   0x1   :  { %s613_s14 = smov 0  }
   0x2 LB: > { %s484_s15 = sadd.s32 4294967295, %s586_s14   ;;  %s626_s16 = sadd.s32 1, %s586_s14   ;;  %s586_s14 = sphi %s613_s14, %s691_s14   ;;  %s582_s13 = sphi %s611_s13, %s690_s13   ;;  %s578_s12 = sphi %s609_s12, %s689_s12  }
   0x3   : > { %s38_s17 = ssub.s32 %s586_s14, %s626_s16  ;;  %s41_s18 = sadd.s32 1, %s582_s13 }
   0x4   : > { %p39_p0 = scmp.eq.s32.totalorder %s38_s17, 0  ;;  %p48_p1 = scmp.ne.s32.totalorder %s582_s13, %s578_s12 }
   0x5   : > { %p49_p2 = scmp.eq.s32.totalorder %s586_s14, 0  ;;  %p487_p4 = scmp.ge.s32.totalorder %s586_s14, 2 }
   0x6   : > { %s635_s19 = scalar_select %p39_p0, %s582_s13, %s41_s18  }
   0x7   : > { %p50_p3 = por %p49_p2, %p48_p1  ;;  %127 = sbr.rel (%p487_p4) target bundleno = 24 (0x18), region = 24 }
   0xc   : > { %130 = sbr.rel (!%p50_p3) target bundleno = 24 (0x18), region = 28  ;;  %s132_s20 = sand.u32 (%p50_p3), 1, %s582_s13  }
   0xd   : > { %s513_s21 = sshll.u32 (%p50_p3), %s586_s14, 3  ;;  %s488_s22 = sshll.u32 (%p50_p3), %s132_s20, 7 }
   0xe   : > { %s643_s25 = scalar_lea.vmem (%p50_p3), %s686_s1, %s513_s21  ;;  %s134_s26 = scalar_lea.vmem (%p50_p3), [#allocation2], %s488_s22 }
   0xf   : > { %v196_v0 = vld [vmem:[%s643_s25] sm:$0xff] (%p50_p3)  ;;  %v198_v1 = vld [vmem:[%s643_s25 + $0x10] sm:$0xff] (%p50_p3) }
  0x10   : > { %v200_v2 = vld [vmem:[%s643_s25 + $0x20] sm:$0xff] (%p50_p3)  ;;  %197 = vst [vmem:[%s134_s26] sm:$0xff] (%p50_p3), %v196_v0  ;;  %199 = vst [vmem:[%s134_s26 + $0x8] sm:$0xff] (%p50_p3), %v198_v1  ;;  %v202_v3 = vld [vmem:[%s643_s25 + $0x30] sm:$0xff] (%p50_p3) }
  0x11   : > { %201 = vst [vmem:[%s134_s26 + $0x10] sm:$0xff] %v200_v2  ;;  %v204_v4 = vld [vmem:[%s643_s25 + $0x40] sm:$0xff]  ;;  %v206_v5 = vld [vmem:[%s643_s25 + $0x50] sm:$0xff]  ;;  %203 = vst [vmem:[%s134_s26 + $0x18] sm:$0xff] %v202_v3 }
  0x12   : > { %205 = vst [vmem:[%s134_s26 + $0x20] sm:$0xff] %v204_v4  ;;  %207 = vst [vmem:[%s134_s26 + $0x28] sm:$0xff] %v206_v5  ;;  %v208_v6 = vld [vmem:[%s643_s25 + $0x60] sm:$0xff]  ;;  %v210_v7 = vld [vmem:[%s643_s25 + $0x70] sm:$0xff] }
  0x13   : > { %v212_v8 = vld [vmem:[%s643_s25 + $0x80] sm:$0xff]  ;;  %209 = vst [vmem:[%s134_s26 + $0x30] sm:$0xff] %v208_v6  ;;  %211 = vst [vmem:[%s134_s26 + $0x38] sm:$0xff] %v210_v7  ;;  %v214_v9 = vld [vmem:[%s643_s25 + $0x90] sm:$0xff] }
  0x14   : > { %213 = vst [vmem:[%s134_s26 + $0x40] sm:$0xff] %v212_v8  ;;  %v216_v10 = vld [vmem:[%s643_s25 + $0xa0] sm:$0xff]  ;;  %v218_v11 = vld [vmem:[%s643_s25 + $0xb0] sm:$0xff]  ;;  %215 = vst [vmem:[%s134_s26 + $0x48] sm:$0xff] %v214_v9 }
  0x15   : > { %217 = vst [vmem:[%s134_s26 + $0x50] sm:$0xff] %v216_v10  ;;  %219 = vst [vmem:[%s134_s26 + $0x58] sm:$0xff] %v218_v11  ;;  %v220_v12 = vld [vmem:[%s643_s25 + $0xc0] sm:$0xff]  ;;  %v222_v13 = vld [vmem:[%s643_s25 + $0xd0] sm:$0xff] }
  0x16   : > { %v224_v14 = vld [vmem:[%s643_s25 + $0xe0] sm:$0xff]  ;;  %221 = vst [vmem:[%s134_s26 + $0x60] sm:$0xff] %v220_v12  ;;  %223 = vst [vmem:[%s134_s26 + $0x68] sm:$0xff] %v222_v13  ;;  %v226_v15 = vld [vmem:[%s643_s25 + $0xf0] sm:$0xff] }
  0x17   : > { %225 = vst [vmem:[%s134_s26 + $0x70] sm:$0xff] %v224_v14  ;;  %227 = vst [vmem:[%s134_s26 + $0x78] sm:$0xff] %v226_v15 }
  0x18 PF: > { %p491_p5 = scmp.ge.s32.totalorder %s586_s14, 1  ;;  %p232_p6 = scmp.lt.s32.totalorder %s586_s14, 3 }
  0x1a   : > { %p233_p7 = pnand %p491_p5, %p232_p6 }
  0x1b   : > { %s239_s27 = sand.u32 (!%p233_p7), 1, %s578_s12   ;;  %s493_s7 = sshll.u32 (!%p233_p7), %s484_s15, 1 }
  0x1c   : > { %236 = sbr.rel (%p233_p7) target bundleno = 268 (0x10c), region = 66  ;;  %s492_s30 = sshll.u32 (!%p233_p7), %s239_s27, 7 }
  0x1d   : > { %s241_s4 = scalar_lea.vmem (!%p233_p7), [#allocation2], %s492_s30  ;;  %p264_p8 = scmp.lt.s32.totalorder (!%p233_p7), %s493_s7, 3 }
  0x21   : > { %v287_v16 = vld [vmem:[%s687_s2] sm:$0xff]  ;;  %v588_v17 = vmov 0   ;;  %v540_v18 = vld [vmem:[%s241_s4 + $0x74] ss:$8 sps:$4 sm:$0xff]   ;;  %v542_v19 = vld [vmem:[%s241_s4 + $0x70] ss:$8 sps:$4 sm:$0xff]  }
  0x22   : > { %405 = vmatprep.mubr.bf16.mxu0 %v588_v17  ;;  %539 = vset.pattern.permute.xlu0 %v588_v17  ;;  %v543_v20 = vld [vmem:[%s241_s4 + $0x64] ss:$8 sps:$4 sm:$0xff]   ;;  %v545_v21 = vld [vmem:[%s241_s4 + $0x60] ss:$8 sps:$4 sm:$0xff]   ;;  %v546_v22 = vld [vmem:[%s241_s4 + $0x54] ss:$8 sps:$4 sm:$0xff]  }
  0x23   : > { %290 = vperm.xlu0 %539, %v287_v16   ;;  %373 = vmatprep.subr.bf16.mxu0 %v540_v18  ;;  %v548_v23 = vld [vmem:[%s241_s4 + $0x50] ss:$8 sps:$4 sm:$0xff]   ;;  %v549_v24 = vld [vmem:[%s241_s4 + $0x44] ss:$8 sps:$4 sm:$0xff]   ;;  %v551_v25 = vld [vmem:[%s241_s4 + $0x40] ss:$8 sps:$4 sm:$0xff]  }
  0x24   : > { %374 = vmatpush1.bf16.msra.mxu0 %v542_v19  ;;  %v552_v26 = vld [vmem:[%s241_s4 + $0x34] ss:$8 sps:$4 sm:$0xff]   ;;  %v554_v27 = vld [vmem:[%s241_s4 + $0x30] ss:$8 sps:$4 sm:$0xff]   ;;  %v555_v28 = vld [vmem:[%s241_s4 + $0x24] ss:$8 sps:$4 sm:$0xff]  }
  0x25   : > { %375 = vmatprep.subr.bf16.mxu0 %v543_v20  ;;  %v557_v29 = vld [vmem:[%s241_s4 + $0x20] ss:$8 sps:$4 sm:$0xff]   ;;  %v558_v30 = vld [vmem:[%s241_s4 + $0x14] ss:$8 sps:$4 sm:$0xff]   ;;  %v560_v31 = vld [vmem:[%s241_s4 + $0x10] ss:$8 sps:$4 sm:$0xff]  }
  0x26   : > { %v561_v32 = vld [vmem:[%s241_s4 + $0x4] ss:$8 sps:$4 sm:$0xff]   ;;  %v563_v33 = vld [vmem:[%s241_s4] ss:$8 sps:$4 sm:$0xff]   ;;  %s693_s7 = smov (!%p264_p8, %s493_s7), 3 }
  0x27   : > { %v270_v34 = vld [vmem:[%s685_s0] sm:$0xf]  ;;  %s494_s8 = sshll.u32 %s693_s7, 3 }
  0x28   : > { %376 = vmatpush1.bf16.msra.mxu0 %v545_v21  ;;  %s267_s11 = scalar_lea.vmem %s688_s3, %s494_s8 }
  0x29   : > { %377 = vmatprep.subr.bf16.mxu0 %v546_v22 }
  0x2c   : > { %378 = vmatpush1.bf16.msra.mxu0 %v548_v23 }
  0x2d   : > { %379 = vmatprep.subr.bf16.mxu0 %v549_v24 }
  0x30   : > { %380 = vmatpush1.bf16.msra.mxu0 %v551_v25 }
  0x31   : > { %381 = vmatprep.subr.bf16.mxu0 %v552_v26 }
  0x34   : > { %382 = vmatpush1.bf16.msra.mxu0 %v554_v27 }
  0x35   : > { %383 = vmatprep.subr.bf16.mxu0 %v555_v28 }
  0x38   : > { %384 = vmatpush1.bf16.msra.mxu0 %v557_v29 }
  0x39   : > { %385 = vmatprep.subr.bf16.mxu0 %v558_v30 }
  0x3c   : > { %386 = vmatpush1.bf16.msra.mxu0 %v560_v31 }
  0x3d   : > { %387 = vmatprep.subr.bf16.mxu0 %v561_v32 }
  0x40   : > { %388 = vmatpush1.bf16.msra.mxu0 %v563_v33 }
  0x43   : > { %406 = vmatmul.mubr.bf16.vlgmr.msra.gmra.mxu0 %v270_v34 }
  0x9e   : > { %v291_v35 = vpop.permute.xlu0 %290 }
 0x103   : > { %v407_v36 = vpop.f32.mrf.mxu0 }
 0x104   : > { %v408_v37 = vadd.f32 %v407_v36, %v291_v35 }
 0x105   : > { %v409_v38 = vpop.f32.mrf.mxu0 }
 0x106   : > { %vm414_vm0 = vcmp.gt.f32.partialorder %v408_v37, 0.0  ;;  %v416_v39 = vmul.f32 0.1, %v408_v37  ;;  %v410_v40 = vadd.f32 %v409_v38, %v291_v35 }
 0x107   : > { %v411_v41 = vpop.f32.mrf.mxu0 }
 0x108   : > { %v418_v42 = vsel %vm414_vm0, %v408_v37, %v416_v39  ;;  %vm415_vm1 = vcmp.gt.f32.partialorder %v410_v40, 0.0  ;;  %v417_v43 = vmul.f32 0.1, %v410_v40 }
 0x109   : > { %420 = vst [vmem:[%s267_s11] sm:$0xff] %v418_v42  ;;  %v412_v44 = vpop.f32.mrf.mxu0 }
 0x10a   : > { %v419_v45 = vsel %vm415_vm1, %v410_v40, %v417_v43 }
 0x10b   : > { %421 = vst [vmem:[%s267_s11 + $0x8] sm:$0xff] %v419_v45 }
 0x10c PF: > { %p10_p9 = scmp.ge.s32.totalorder %s626_s16, 4   ;;  %s689_s12 = smov %s582_s13 }
 0x10d   : > { %s690_s13 = smov %s635_s19  ;;  %s691_s14 = smov %s626_s16 }
 0x10e   :  { %12 = sbr.rel (!%p10_p9) target bundleno = 2 (0x2), region = 105 }

// kernel: forward.7
= control target key start
LH: loop header
LB: loop body
LE: loop exit
PB: predicated region body
PF: predicated region fallthrough
CT: control target
= control target key end

     0   :  { %v203_v0 = vmov 0.0   ;;  %vm204_vm0 = vmmov 0   ;;  %v205_v2 = vmov 0   ;;  %s265_s1 = inlined_call_operand.vmem [shape: bf16[128,128], index: 1, kind: input, shape index: {}]   ;;  %s266_s2 = inlined_call_operand.vmem [shape: f32[16,1], index: 2, kind: input, shape index: {}]   ;;  %s267_s0 = inlined_call_operand.vmem [shape: bf16[16,128], index: 0, kind: input, shape index: {}]   ;;  %s268_s3 = inlined_call_operand.vmem [shape: f32[16,128], index: 3, kind: output, shape index: {}]  }
   0x1   :  { %170 = vmatprep.subr.bf16.mxu0 %v203_v0  ;;  %v194_v1 = vld [vmem:[%s265_s1 + $0x38] sm:$0xff]   ;;  %186 = vmatprep.mubr.msk.bf16.mxu0 %vm204_vm0, %v203_v0  ;;  %v195_v3 = vld [vmem:[%s265_s1 + $0x30] sm:$0xff]   ;;  %v196_v4 = vld [vmem:[%s265_s1 + $0x28] sm:$0xff]  }
   0x2   :  { %193 = vset.pattern.permute.xlu0 %v205_v2  ;;  %171 = vmatpush3.bf16.msra.mxu0 %v194_v1  ;;  %v33_v5 = vld [vmem:[%s266_s2] sm:$0xff]  ;;  %v34_v7 = vld [vmem:[%s266_s2 + $0x8] sm:$0xff]  ;;  %v198_v8 = vld [vmem:[%s265_s1 + $0x18] sm:$0xff]  }
   0x3   :  { %172 = vmatprep.subr.bf16.mxu0 %v203_v0  ;;  %v197_v6 = vld [vmem:[%s265_s1 + $0x20] sm:$0xff]   ;;  %37 = vperm.xlu0 %193, %v33_v5   ;;  %v199_v9 = vld [vmem:[%s265_s1 + $0x10] sm:$0xff]   ;;  %v200_v10 = vld [vmem:[%s265_s1 + $0x8] sm:$0xff]  }
   0x4   :  { %v201_v11 = vld [vmem:[%s265_s1] sm:$0xff]  }
   0x5   :  { %v202_v12 = vld [vmem:[%s267_s0] sm:$0xff]  }
   0x6   :  { %173 = vmatpush3.bf16.msra.mxu0 %v195_v3 }
   0x7   :  { %174 = vmatprep.subr.bf16.mxu0 %v203_v0  ;;  %42 = vperm.xlu0 %193, %v34_v7  }
   0xa   :  { %175 = vmatpush3.bf16.msra.mxu0 %v196_v4 }
   0xb   :  { %176 = vmatprep.subr.bf16.mxu0 %v203_v0 }
   0xe   :  { %177 = vmatpush3.bf16.msra.mxu0 %v197_v6 }
   0xf   :  { %178 = vmatprep.subr.bf16.mxu0 %v203_v0 }
  0x12   :  { %179 = vmatpush3.bf16.msra.mxu0 %v198_v8 }
  0x13   :  { %180 = vmatprep.subr.bf16.mxu0 %v203_v0 }
  0x16   :  { %181 = vmatpush3.bf16.msra.mxu0 %v199_v9 }
  0x17   :  { %182 = vmatprep.subr.bf16.mxu0 %v203_v0 }
  0x1a   :  { %183 = vmatpush3.bf16.msra.mxu0 %v200_v10 }
  0x1b   :  { %184 = vmatprep.subr.bf16.mxu0 %v203_v0 }
  0x1e   :  { %185 = vmatpush3.bf16.msra.mxu0 %v201_v11 }
  0x21   :  { %187 = vmatmul.mubr.bf16.vlgmr.msra.gmra.mxu0 %v202_v12 }
  0x7e   :  { %v38_v13 = vpop.permute.xlu0 %37 }
  0x82   :  { %v43_v18 = vpop.permute.xlu0 %42 }
  0xe1   :  { %v133_v14 = vpop.f32.mrf.mxu0 }
  0xe2   :  { %v134_v15 = vadd.f32 %v133_v14, %v38_v13 }
  0xe3   :  { %v188_v16 = vpop.f32.mrf.mxu0 }
  0xe4   :  { %vm140_vm1 = vcmp.gt.f32.partialorder %v134_v15, 0.0  ;;  %v142_v17 = vmul.f32 0.1, %v134_v15 }
  0xe5   :  { %v136_v19 = vpop.f32.mrf.mxu0 }
  0xe6   :  { %v144_v20 = vsel %vm140_vm1, %v134_v15, %v142_v17  ;;  %v137_v21 = vadd.f32 %v136_v19, %v43_v18 }
  0xe7   :  { %146 = vst [vmem:[%s268_s3] sm:$0xff] %v144_v20  ;;  %v189_v22 = vpop.f32.mrf.mxu0 }
  0xe8   :  { %vm141_vm2 = vcmp.gt.f32.partialorder %v137_v21, 0.0  ;;  %v143_v23 = vmul.f32 0.1, %v137_v21 }
  0xea   :  { %v145_v24 = vsel %vm141_vm2, %v137_v21, %v143_v23 }
  0xeb   :  { %147 = vst [vmem:[%s268_s3 + $0x8] sm:$0xff] %v145_v24 }

// kernel: forward.8
= control target key start
LH: loop header
LB: loop body
LE: loop exit
PB: predicated region body
PF: predicated region fallthrough
CT: control target
= control target key end

     0   :  { %v281_v1 = vmov 0   ;;  %s368_s1 = inlined_call_operand.vmem [shape: bf16[256,128], index: 1, kind: input, shape index: {}]   ;;  %s369_s0 = inlined_call_operand.vmem [shape: bf16[16,256], index: 0, kind: input, shape index: {}]   ;;  %s370_s2 = inlined_call_operand.vmem [shape: f32[16,1], index: 2, kind: input, shape index: {}]   ;;  %s371_s3 = inlined_call_operand.vmem [shape: f32[16,128], index: 3, kind: output, shape index: {}]  }
   0x1   :  { %v262_v0 = vld [vmem:[%s368_s1 + $0x78] sm:$0xff]   ;;  %261 = vset.pattern.permute.xlu0 %v281_v1  ;;  %v264_v3 = vld [vmem:[%s368_s1 + $0x70] sm:$0xff]   ;;  %v266_v5 = vld [vmem:[%s368_s1 + $0x68] sm:$0xff]  }
   0x2   :  { %v263_v2 = vld [vmem:[%s368_s1 + $0x38] sm:$0xff]   ;;  %238 = vmatprep.subr.bf16.mxu0 %v262_v0  ;;  %v265_v4 = vld [vmem:[%s368_s1 + $0x30] sm:$0xff]   ;;  %v267_v6 = vld [vmem:[%s368_s1 + $0x28] sm:$0xff]  }
   0x3   :  { %239 = vmatpush3.bf16.msra.mxu0 %v263_v2  ;;  %v268_v7 = vld [vmem:[%s368_s1 + $0x60] sm:$0xff]   ;;  %v270_v9 = vld [vmem:[%s368_s1 + $0x58] sm:$0xff]   ;;  %v272_v11 = vld [vmem:[%s368_s1 + $0x50] sm:$0xff]  }
   0x4   :  { %240 = vmatprep.subr.bf16.mxu0 %v264_v3  ;;  %v269_v8 = vld [vmem:[%s368_s1 + $0x20] sm:$0xff]   ;;  %v271_v10 = vld [vmem:[%s368_s1 + $0x18] sm:$0xff]   ;;  %v273_v14 = vld [vmem:[%s368_s1 + $0x10] sm:$0xff]  }
   0x5   :  { %v280_v12 = vld [vmem:[%s369_s0 + $0x4] ss:$8 sps:$4 sm:$0xff]   ;;  %v278_v20 = vld [vmem:[%s369_s0] ss:$8 sps:$4 sm:$0xff]  }
   0x6   :  { %v49_v13 = vld [vmem:[%s370_s2] sm:$0xff]  ;;  %199 = vmatprep.mubr.bf16.mxu0 %v280_v12  ;;  %v50_v15 = vld [vmem:[%s370_s2 + $0x8] sm:$0xff] }
   0x7   :  { %241 = vmatpush3.bf16.msra.mxu0 %v265_v4  ;;  %53 = vperm.xlu0 %261, %v49_v13   ;;  %v274_v16 = vld [vmem:[%s368_s1 + $0x48] sm:$0xff]   ;;  %v276_v18 = vld [vmem:[%s368_s1 + $0x40] sm:$0xff]  }
   0x8   :  { %242 = vmatprep.subr.bf16.mxu0 %v266_v5  ;;  %v275_v17 = vld [vmem:[%s368_s1 + $0x8] sm:$0xff]   ;;  %v277_v19 = vld [vmem:[%s368_s1] sm:$0xff]  }
   0xb   :  { %243 = vmatpush3.bf16.msra.mxu0 %v267_v6  ;;  %58 = vperm.xlu0 %261, %v50_v15  }
   0xc   :  { %244 = vmatprep.subr.bf16.mxu0 %v268_v7 }
   0xf   :  { %245 = vmatpush3.bf16.msra.mxu0 %v269_v8 }
  0x10   :  { %246 = vmatprep.subr.bf16.mxu0 %v270_v9 }
  0x13   :  { %247 = vmatpush3.bf16.msra.mxu0 %v271_v10 }
  0x14   :  { %248 = vmatprep.subr.bf16.mxu0 %v272_v11 }
  0x17   :  { %249 = vmatpush3.bf16.msra.mxu0 %v273_v14 }
  0x18   :  { %250 = vmatprep.subr.bf16.mxu0 %v274_v16 }
  0x1b   :  { %251 = vmatpush3.bf16.msra.mxu0 %v275_v17 }
  0x1c   :  { %252 = vmatprep.subr.bf16.mxu0 %v276_v18 }
  0x1f   :  { %253 = vmatpush3.bf16.msra.mxu0 %v277_v19 }
  0x22   :  { %200 = vmatmul.mubr.bf16.vlgmr.msra.gmra.mxu0 %v278_v20 }
  0x82   :  { %v54_v22 = vpop.permute.xlu0 %53 }
  0x86   :  { %v59_v30 = vpop.permute.xlu0 %58 }
  0xe2   :  { %v254_v21 = vpop.f32.mrf.mxu0 }
  0xe4   :  { %v255_v23 = vpop.f32.mrf.mxu0 }
  0xe5   :  { %v256_v24 = vadd.f32 %v255_v23, %v254_v21 }
  0xe6   :  { %v257_v25 = vpop.f32.mrf.mxu0 }
  0xe7   :  { %v202_v26 = vadd.f32 %v256_v24, %v54_v22 }
  0xe8   :  { %v258_v27 = vpop.f32.mrf.mxu0 }
  0xe9   :  { %vm208_vm0 = vcmp.gt.f32.partialorder %v202_v26, 0.0  ;;  %v210_v28 = vmul.f32 0.1, %v202_v26  ;;  %v259_v29 = vadd.f32 %v258_v27, %v257_v25 }
  0xeb   :  { %v212_v31 = vsel %vm208_vm0, %v202_v26, %v210_v28  ;;  %v205_v32 = vadd.f32 %v259_v29, %v59_v30 }
  0xec   :  { %214 = vst [vmem:[%s371_s3] sm:$0xff] %v212_v31 }
  0xed   :  { %vm209_vm1 = vcmp.gt.f32.partialorder %v205_v32, 0.0  ;;  %v211_v33 = vmul.f32 0.1, %v205_v32 }
  0xef   :  { %v213_v34 = vsel %vm209_vm1, %v205_v32, %v211_v33 }
  0xf0   :  { %215 = vst [vmem:[%s371_s3 + $0x8] sm:$0xff] %v213_v34 }

// kernel: forward.10
= control target key start
LH: loop header
LB: loop body
LE: loop exit
PB: predicated region body
PF: predicated region fallthrough
CT: control target
= control target key end

     0   :  { %v183_v0 = vmov 0.0   ;;  %vm184_vm0 = vmmov 0   ;;  %v185_v2 = vmov 0   ;;  %s239_s1 = inlined_call_operand.vmem [shape: bf16[128,128], index: 1, kind: input, shape index: {}]   ;;  %s240_s2 = inlined_call_operand.vmem [shape: f32[8,1], index: 2, kind: input, shape index: {}]   ;;  %s241_s0 = inlined_call_operand.vmem [shape: bf16[8,128], index: 0, kind: input, shape index: {}]   ;;  %s242_s3 = inlined_call_operand.vmem [shape: f32[8,128], index: 3, kind: output, shape index: {}]  }
   0x1   :  { %151 = vmatprep.subr.bf16.mxu0 %v183_v0  ;;  %v175_v1 = vld [vmem:[%s239_s1 + $0x38] sm:$0xff]   ;;  %167 = vmatprep.mubr.msk.bf16.mxu0 %vm184_vm0, %v183_v0  ;;  %v176_v3 = vld [vmem:[%s239_s1 + $0x30] sm:$0xff]   ;;  %v177_v4 = vld [vmem:[%s239_s1 + $0x28] sm:$0xff]  }
   0x2   :  { %174 = vset.pattern.permute.xlu0 %v185_v2  ;;  %152 = vmatpush3.bf16.msra.mxu0 %v175_v1  ;;  %v32_v5 = vld [vmem:[%s240_s2] sm:$0xff]  ;;  %v179_v7 = vld [vmem:[%s239_s1 + $0x18] sm:$0xff]   ;;  %v180_v8 = vld [vmem:[%s239_s1 + $0x10] sm:$0xff]  }
   0x3   :  { %153 = vmatprep.subr.bf16.mxu0 %v183_v0  ;;  %35 = vperm.xlu0 %174, %v32_v5   ;;  %v178_v6 = vld [vmem:[%s239_s1 + $0x20] sm:$0xff]   ;;  %v181_v9 = vld [vmem:[%s239_s1 + $0x8] sm:$0xff]  }
   0x4   :  { %v182_v10 = vld [vmem:[%s239_s1] sm:$0xff]  }
   0x5   :  { %v15_v11 = vld [vmem:[%s241_s0] sm:$0xf] }
   0x6   :  { %154 = vmatpush3.bf16.msra.mxu0 %v176_v3 }
   0x7   :  { %155 = vmatprep.subr.bf16.mxu0 %v183_v0 }
   0xa   :  { %156 = vmatpush3.bf16.msra.mxu0 %v177_v4 }
   0xb   :  { %157 = vmatprep.subr.bf16.mxu0 %v183_v0 }
   0xe   :  { %158 = vmatpush3.bf16.msra.mxu0 %v178_v6 }
   0xf   :  { %159 = vmatprep.subr.bf16.mxu0 %v183_v0 }
  0x12   :  { %160 = vmatpush3.bf16.msra.mxu0 %v179_v7 }
  0x13   :  { %161 = vmatprep.subr.bf16.mxu0 %v183_v0 }
  0x16   :  { %162 = vmatpush3.bf16.msra.mxu0 %v180_v8 }
  0x17   :  { %163 = vmatprep.subr.bf16.mxu0 %v183_v0 }
  0x1a   :  { %164 = vmatpush3.bf16.msra.mxu0 %v181_v9 }
  0x1b   :  { %165 = vmatprep.subr.bf16.mxu0 %v183_v0 }
  0x1e   :  { %166 = vmatpush3.bf16.msra.mxu0 %v182_v10 }
  0x21   :  { %168 = vmatmul.mubr.bf16.vlgmr.msra.gmra.mxu0 %v15_v11 }
  0x7e   :  { %v36_v12 = vpop.permute.xlu0 %35 }
  0xe1   :  { %v120_v13 = vpop.f32.mrf.mxu0 }
  0xe2   :  { %v121_v14 = vadd.f32 %v120_v13, %v36_v12 }
  0xe3   :  { %v169_v15 = vpop.f32.mrf.mxu0 }
  0xe4   :  { %vm126_vm1 = vcmp.gt.f32.partialorder %v121_v14, 0.0  ;;  %v127_v16 = vmul.f32 0.1, %v121_v14 }
  0xe5   :  { %v123_v17 = vpop.f32.mrf.mxu0 }
  0xe6   :  { %v128_v18 = vsel %vm126_vm1, %v121_v14, %v127_v16 }
  0xe7   :  { %129 = vst [vmem:[%s242_s3] sm:$0xff] %v128_v18  ;;  %v170_v19 = vpop.f32.mrf.mxu0 }

// kernel: forward.11
= control target key start
LH: loop header
LB: loop body
LE: loop exit
PB: predicated region body
PF: predicated region fallthrough
CT: control target
= control target key end

     0   :  { %s689_s12 = smov 0   ;;  %s691_s13 = smov 0   ;;  %s804_s0 = inlined_call_operand.vmem [shape: bf16[24,128], index: 0, kind: input, shape index: {}]   ;;  %s805_s1 = inlined_call_operand.vmem [shape: bf16[128,512], index: 1, kind: input, shape index: {}]   ;;  %s806_s2 = inlined_call_operand.vmem [shape: f32[24,1], index: 2, kind: input, shape index: {}]   ;;  %s807_s3 = inlined_call_operand.vmem [shape: f32[24,512], index: 3, kind: output, shape index: {}]  }
   0x1   :  { %s693_s14 = smov 0  }
   0x2 LB: > { %s541_s15 = sadd.s32 4294967295, %s666_s14   ;;  %s706_s16 = sadd.s32 1, %s666_s14   ;;  %s666_s14 = sphi %s693_s14, %s811_s14   ;;  %s662_s13 = sphi %s691_s13, %s810_s13   ;;  %s658_s12 = sphi %s689_s12, %s809_s12  }
   0x3   : > { %s38_s17 = ssub.s32 %s666_s14, %s706_s16  ;;  %s41_s18 = sadd.s32 1, %s662_s13 }
   0x4   : > { %p39_p0 = scmp.eq.s32.totalorder %s38_s17, 0  ;;  %p48_p1 = scmp.ne.s32.totalorder %s662_s13, %s658_s12 }
   0x5   : > { %p49_p2 = scmp.eq.s32.totalorder %s666_s14, 0  ;;  %p99_p3 = scmp.eq.s32.totalorder %s541_s15, 1 }
   0x6   : > { %s717_s19 = scalar_select %p39_p0, %s662_s13, %s41_s18  }
   0x7   : > { %p50_p4 = por %p49_p2, %p48_p1  ;;  %p719_p5 = por %p99_p3, %p48_p1 }
   0x8   : > { %p544_p6 = scmp.ge.s32.totalorder %s666_s14, 2 }
   0xa   : > { %127 = sbr.rel (%p544_p6) target bundleno = 27 (0x1b), region = 24 }
   0xf   : > { %130 = sbr.rel (!%p50_p4) target bundleno = 27 (0x1b), region = 28  ;;  %s132_s21 = sand.u32 (%p50_p4), 1, %s662_s13  }
  0x10   : > { %s572_s22 = sshll.u32 (%p50_p4), %s666_s14, 3  ;;  %s545_s23 = sshll.u32 (%p50_p4), %s132_s21, 7 }
  0x11   : > { %s729_s26 = scalar_lea.vmem (%p50_p4), %s805_s1, %s572_s22  ;;  %s134_s27 = scalar_lea.vmem (%p50_p4), [#allocation2], %s545_s23 }
  0x12   : > { %v196_v0 = vld [vmem:[%s729_s26] sm:$0xff] (%p50_p4)  ;;  %v198_v1 = vld [vmem:[%s729_s26 + $0x10] sm:$0xff] (%p50_p4) }
  0x13   : > { %v200_v2 = vld [vmem:[%s729_s26 + $0x20] sm:$0xff] (%p50_p4)  ;;  %197 = vst [vmem:[%s134_s27] sm:$0xff] (%p50_p4), %v196_v0  ;;  %199 = vst [vmem:[%s134_s27 + $0x8] sm:$0xff] (%p50_p4), %v198_v1  ;;  %v202_v3 = vld [vmem:[%s729_s26 + $0x30] sm:$0xff] (%p50_p4) }
  0x14   : > { %201 = vst [vmem:[%s134_s27 + $0x10] sm:$0xff] %v200_v2  ;;  %v204_v4 = vld [vmem:[%s729_s26 + $0x40] sm:$0xff]  ;;  %v206_v5 = vld [vmem:[%s729_s26 + $0x50] sm:$0xff]  ;;  %203 = vst [vmem:[%s134_s27 + $0x18] sm:$0xff] %v202_v3 }
  0x15   : > { %205 = vst [vmem:[%s134_s27 + $0x20] sm:$0xff] %v204_v4  ;;  %207 = vst [vmem:[%s134_s27 + $0x28] sm:$0xff] %v206_v5  ;;  %v208_v6 = vld [vmem:[%s729_s26 + $0x60] sm:$0xff]  ;;  %v210_v7 = vld [vmem:[%s729_s26 + $0x70] sm:$0xff] }
  0x16   : > { %v212_v8 = vld [vmem:[%s729_s26 + $0x80] sm:$0xff]  ;;  %209 = vst [vmem:[%s134_s27 + $0x30] sm:$0xff] %v208_v6  ;;  %211 = vst [vmem:[%s134_s27 + $0x38] sm:$0xff] %v210_v7  ;;  %v214_v9 = vld [vmem:[%s729_s26 + $0x90] sm:$0xff] }
  0x17   : > { %213 = vst [vmem:[%s134_s27 + $0x40] sm:$0xff] %v212_v8  ;;  %v216_v10 = vld [vmem:[%s729_s26 + $0xa0] sm:$0xff]  ;;  %v218_v11 = vld [vmem:[%s729_s26 + $0xb0] sm:$0xff]  ;;  %215 = vst [vmem:[%s134_s27 + $0x48] sm:$0xff] %v214_v9 }
  0x18   : > { %217 = vst [vmem:[%s134_s27 + $0x50] sm:$0xff] %v216_v10  ;;  %219 = vst [vmem:[%s134_s27 + $0x58] sm:$0xff] %v218_v11  ;;  %v220_v12 = vld [vmem:[%s729_s26 + $0xc0] sm:$0xff]  ;;  %v222_v13 = vld [vmem:[%s729_s26 + $0xd0] sm:$0xff] }
  0x19   : > { %v224_v14 = vld [vmem:[%s729_s26 + $0xe0] sm:$0xff]  ;;  %221 = vst [vmem:[%s134_s27 + $0x60] sm:$0xff] %v220_v12  ;;  %223 = vst [vmem:[%s134_s27 + $0x68] sm:$0xff] %v222_v13  ;;  %v226_v15 = vld [vmem:[%s729_s26 + $0xf0] sm:$0xff] }
  0x1a   : > { %225 = vst [vmem:[%s134_s27 + $0x70] sm:$0xff] %v224_v14  ;;  %227 = vst [vmem:[%s134_s27 + $0x78] sm:$0xff] %v226_v15 }
  0x1b PF: > { %p548_p7 = scmp.ge.s32.totalorder %s666_s14, 1  ;;  %p232_p8 = scmp.lt.s32.totalorder %s666_s14, 3 }
  0x1d   : > { %p233_p9 = pnand %p548_p7, %p232_p8 }
  0x1e   : > { %s239_s28 = sand.u32 (!%p233_p9), 1, %s658_s12  }
  0x1f   : > { %236 = sbr.rel (%p233_p9) target bundleno = 282 (0x11a), region = 66  ;;  %s549_s29 = sshll.u32 (!%p233_p9), %s239_s28, 7 }
  0x20   : > { %s758_s7 = scalar_lea.vmem (!%p233_p9), [#allocation2], %s549_s29  ;;  %s590_s21 = smul.u32 (!%p233_p9), 48, %s239_s28 }
  0x22   : > { %s260_s22 = scalar_lea.vmem (!%p233_p9), [#allocation3], %s590_s21 }
  0x24   : > { %v668_v16 = vmov 0   ;;  %v283_v17 = vld [vmem:[%s806_s2] sm:$0xff]  ;;  %v285_v18 = vld [vmem:[%s806_s2 + $0x10] sm:$0xff]  ;;  %v284_v22 = vld [vmem:[%s806_s2 + $0x8] sm:$0xff]  ;;  %s573_s12 = sshll.u32 (%p719_p5), %s541_s15, 4 }
  0x25   : > { %423 = vmatprep.mubr.bf16.mxu0 %v668_v16  ;;  %433 = vmatprep.mubr.bf16.mxu1 %v668_v16  ;;  %v618_v19 = vld [vmem:[%s758_s7 + $0x74] ss:$8 sps:$4 sm:$0xff]   ;;  %v620_v20 = vld [vmem:[%s758_s7 + $0x70] ss:$8 sps:$4 sm:$0xff]   ;;  %v621_v21 = vld [vmem:[%s758_s7 + $0x64] ss:$8 sps:$4 sm:$0xff]   ;;  %s457_s25 = scalar_lea.vmem (%p719_p5), %s807_s3, %s573_s12 }
  0x26   : > { %616 = vset.pattern.permute.xlu0 %v668_v16  ;;  %617 = vset.pattern.permute.xlu1 %v668_v16  ;;  %v623_v23 = vld [vmem:[%s758_s7 + $0x60] ss:$8 sps:$4 sm:$0xff]   ;;  %v624_v24 = vld [vmem:[%s758_s7 + $0x54] ss:$8 sps:$4 sm:$0xff]   ;;  %v626_v25 = vld [vmem:[%s758_s7 + $0x50] ss:$8 sps:$4 sm:$0xff]  }
  0x27   : > { %288 = vperm.xlu0 %616, %v283_v17   ;;  %298 = vperm.xlu1 %617, %v285_v18   ;;  %v627_v26 = vld [vmem:[%s758_s7 + $0x44] ss:$8 sps:$4 sm:$0xff]   ;;  %v629_v27 = vld [vmem:[%s758_s7 + $0x40] ss:$8 sps:$4 sm:$0xff]   ;;  %v630_v28 = vld [vmem:[%s758_s7 + $0x34] ss:$8 sps:$4 sm:$0xff]  }
  0x28   : > { %391 = vmatprep.subr.bf16.mxu0 %v618_v19  ;;  %574 = vmatprep.subr.bf16.mxu1 %v618_v19  ;;  %v632_v29 = vld [vmem:[%s758_s7 + $0x30] ss:$8 sps:$4 sm:$0xff]   ;;  %v633_v30 = vld [vmem:[%s758_s7 + $0x24] ss:$8 sps:$4 sm:$0xff]   ;;  %v635_v31 = vld [vmem:[%s758_s7 + $0x20] ss:$8 sps:$4 sm:$0xff]  }
  0x29   : > { %392 = vmatpush1.bf16.msra.mxu0 %v620_v20  ;;  %582 = vmatpush1.bf16.msra.mxu1 %v620_v20  ;;  %v636_v32 = vld [vmem:[%s758_s7 + $0x14] ss:$8 sps:$4 sm:$0xff]   ;;  %v638_v33 = vld [vmem:[%s758_s7 + $0x10] ss:$8 sps:$4 sm:$0xff]   ;;  %v639_v34 = vld [vmem:[%s758_s7 + $0x4] ss:$8 sps:$4 sm:$0xff]  }
  0x2a   : > { %393 = vmatprep.subr.bf16.mxu0 %v621_v21  ;;  %575 = vmatprep.subr.bf16.mxu1 %v621_v21  ;;  %v641_v35 = vld [vmem:[%s758_s7] ss:$8 sps:$4 sm:$0xff]  }
  0x2b   : > { %293 = vperm.xlu0 %616, %v284_v22   ;;  %v642_v36 = vld [vmem:[%s804_s0] sm:$0xff]   ;;  %v643_v37 = vld [vmem:[%s804_s0 + $0x8] ss:$0 sps:$4 sm:$0xff]  }
  0x2d   : > { %394 = vmatpush1.bf16.msra.mxu0 %v623_v23  ;;  %583 = vmatpush1.bf16.msra.mxu1 %v623_v23 }
  0x2e   : > { %395 = vmatprep.subr.bf16.mxu0 %v624_v24  ;;  %576 = vmatprep.subr.bf16.mxu1 %v624_v24 }
  0x31   : > { %396 = vmatpush1.bf16.msra.mxu0 %v626_v25  ;;  %584 = vmatpush1.bf16.msra.mxu1 %v626_v25 }
  0x32   : > { %397 = vmatprep.subr.bf16.mxu0 %v627_v26  ;;  %577 = vmatprep.subr.bf16.mxu1 %v627_v26 }
  0x35   : > { %398 = vmatpush1.bf16.msra.mxu0 %v629_v27  ;;  %585 = vmatpush1.bf16.msra.mxu1 %v629_v27 }
  0x36   : > { %399 = vmatprep.subr.bf16.mxu0 %v630_v28  ;;  %578 = vmatprep.subr.bf16.mxu1 %v630_v28 }
  0x39   : > { %400 = vmatpush1.bf16.msra.mxu0 %v632_v29  ;;  %586 = vmatpush1.bf16.msra.mxu1 %v632_v29 }
  0x3a   : > { %401 = vmatprep.subr.bf16.mxu0 %v633_v30  ;;  %579 = vmatprep.subr.bf16.mxu1 %v633_v30 }
  0x3d   : > { %402 = vmatpush1.bf16.msra.mxu0 %v635_v31  ;;  %587 = vmatpush1.bf16.msra.mxu1 %v635_v31 }
  0x3e   : > { %403 = vmatprep.subr.bf16.mxu0 %v636_v32  ;;  %580 = vmatprep.subr.bf16.mxu1 %v636_v32 }
  0x41   : > { %404 = vmatpush1.bf16.msra.mxu0 %v638_v33  ;;  %588 = vmatpush1.bf16.msra.mxu1 %v638_v33 }
  0x42   : > { %405 = vmatprep.subr.bf16.mxu0 %v639_v34  ;;  %581 = vmatprep.subr.bf16.mxu1 %v639_v34 }
  0x45   : > { %406 = vmatpush1.bf16.msra.mxu0 %v641_v35  ;;  %589 = vmatpush1.bf16.msra.mxu1 %v641_v35 }
  0x48   : > { %424 = vmatmul.mubr.bf16.vlgmr.msra.gmra.mxu0 %v642_v36  ;;  %434 = vmatmul.mubr.bf16.vlgmr.msra.gmra.mxu1 %v643_v37 }
  0xa2   : > { %v289_v38 = vpop.permute.xlu0 %288  ;;  %v299_v39 = vpop.permute.xlu1 %298 }
  0xa6   : > { %v294_v46 = vpop.permute.xlu0 %293 }
 0x108   : > { %v425_v40 = vpop.f32.mrf.mxu0  ;;  %v435_v41 = vpop.f32.mrf.mxu1 }
 0x109   : > { %v426_v42 = vadd.f32 %v425_v40, %v289_v38  ;;  %v436_v43 = vadd.f32 %v435_v41, %v299_v39 }
 0x10a   : > { %v427_v44 = vpop.f32.mrf.mxu0  ;;  %v437_v45 = vpop.f32.mrf.mxu1 }
 0x10b   : > { %442 = vst [vmem:[%s260_s22] sm:$0xff] %v426_v42  ;;  %v428_v47 = vadd.f32 %v427_v44, %v289_v38  ;;  %v438_v48 = vadd.f32 %v437_v45, %v299_v39  ;;  %446 = vst [vmem:[%s260_s22 + $0x20] sm:$0xff] %v436_v43 }
 0x10c   : > { %v429_v49 = vpop.f32.mrf.mxu0  ;;  %v439_v50 = vpop.f32.mrf.mxu1 }
 0x10d   : > { %443 = vst [vmem:[%s260_s22 + $0x8] sm:$0xff] %v428_v47  ;;  %447 = vst [vmem:[%s260_s22 + $0x28] sm:$0xff] %v438_v48  ;;  %v430_v51 = vadd.f32 %v429_v49, %v294_v46  ;;  %454 = sbr.rel (!%p719_p5) target bundleno = 282 (0x11a), region = 74 }
 0x10e   : > { %v431_v52 = vpop.f32.mrf.mxu0  ;;  %v440_v53 = vpop.f32.mrf.mxu1 }
 0x10f   : > { %444 = vst [vmem:[%s260_s22 + $0x10] sm:$0xff] %v430_v51  ;;  %v432_v54 = vadd.f32 %v431_v52, %v294_v46 }
 0x111   : > { %445 = vst [vmem:[%s260_s22 + $0x18] sm:$0xff] %v432_v54 }
 0x112   : > { %v470_v55 = vld [vmem:[%s260_s22] sm:$0xff] }
 0x113   : > { %v478_v59 = vld [vmem:[%s260_s22 + $0x20] sm:$0xff]  ;;  %471 = vst [vmem:[%s457_s25] sm:$0xff] %v470_v55 }
 0x114   : > { %v472_v56 = vld [vmem:[%s260_s22 + $0x8] sm:$0xff]  ;;  %479 = vst [vmem:[%s457_s25 + $0x40] sm:$0xff] %v478_v59 }
 0x115   : > { %v480_v60 = vld [vmem:[%s260_s22 + $0x28] sm:$0xff]  ;;  %473 = vst [vmem:[%s457_s25 + $0x8] sm:$0xff] %v472_v56 }
 0x116   : > { %v474_v57 = vld [vmem:[%s260_s22 + $0x10] sm:$0xff]  ;;  %481 = vst [vmem:[%s457_s25 + $0x48] sm:$0xff] %v480_v60 }
 0x117   : > { %475 = vst [vmem:[%s457_s25 + $0x20] sm:$0xff] %v474_v57 }
 0x118   : > { %v476_v58 = vld [vmem:[%s260_s22 + $0x18] sm:$0xff] }
 0x119   : > { %477 = vst [vmem:[%s457_s25 + $0x28] sm:$0xff] %v476_v58 }
 0x11a PF: > { %p10_p10 = scmp.ge.s32.totalorder %s706_s16, 4   ;;  %s809_s12 = smov %s662_s13 }
 0x11b   : > { %s810_s13 = smov %s717_s19  ;;  %s811_s14 = smov %s706_s16 }
 0x11c   :  { %12 = sbr.rel (!%p10_p10) target bundleno = 2 (0x2), region = 128 }

// kernel: forward.9
= control target key start
LH: loop header
LB: loop body
LE: loop exit
PB: predicated region body
PF: predicated region fallthrough
CT: control target
= control target key end

     0   :  { %v218_v1 = vmov 0   ;;  %s287_s1 = inlined_call_operand.vmem [shape: bf16[128,128], index: 1, kind: input, shape index: {}]   ;;  %s288_s0 = inlined_call_operand.vmem [shape: bf16[24,128], index: 0, kind: input, shape index: {}]   ;;  %s289_s2 = inlined_call_operand.vmem [shape: f32[24,1], index: 2, kind: input, shape index: {}]   ;;  %s290_s3 = inlined_call_operand.vmem [shape: f32[24,128], index: 3, kind: output, shape index: {}]  }
   0x1   :  { %v208_v0 = vld [vmem:[%s287_s1 + $0x38] sm:$0xff]   ;;  %206 = vset.pattern.permute.xlu0 %v218_v1  ;;  %207 = vset.pattern.permute.xlu1 %v218_v1  ;;  %v209_v2 = vld [vmem:[%s287_s1 + $0x30] sm:$0xff]   ;;  %v210_v3 = vld [vmem:[%s287_s1 + $0x28] sm:$0xff]  }
   0x2   :  { %185 = vmatprep.subr.bf16.mxu0 %v208_v0  ;;  %v211_v4 = vld [vmem:[%s287_s1 + $0x20] sm:$0xff]   ;;  %v36_v7 = vld [vmem:[%s289_s2 + $0x10] sm:$0xff]  ;;  %v35_v8 = vld [vmem:[%s289_s2 + $0x8] sm:$0xff] }
   0x3   :  { %186 = vmatpush3.bf16.msra.mxu0 %v208_v0  ;;  %v216_v5 = vld [vmem:[%s288_s0] sm:$0xff]   ;;  %49 = vperm.xlu1 %207, %v36_v7   ;;  %v212_v9 = vld [vmem:[%s287_s1 + $0x18] sm:$0xff]   ;;  %v213_v10 = vld [vmem:[%s287_s1 + $0x10] sm:$0xff]  }
   0x4   :  { %187 = vmatprep.subr.bf16.mxu0 %v209_v2  ;;  %v34_v6 = vld [vmem:[%s289_s2] sm:$0xff]  ;;  %201 = vmatprep.mubr.bf16.mxu0 %v216_v5  ;;  %v214_v11 = vld [vmem:[%s287_s1 + $0x8] sm:$0xff]  }
   0x5   :  { %39 = vperm.xlu0 %206, %v34_v6   ;;  %v215_v12 = vld [vmem:[%s287_s1] sm:$0xff]   ;;  %v217_v13 = vld [vmem:[%s288_s0 + $0x8] ss:$0 sps:$4 sm:$0xff]  }
   0x7   :  { %188 = vmatpush3.bf16.msra.mxu0 %v209_v2 }
   0x8   :  { %189 = vmatprep.subr.bf16.mxu0 %v210_v3 }
   0x9   :  { %44 = vperm.xlu0 %206, %v35_v8  }
   0xb   :  { %190 = vmatpush3.bf16.msra.mxu0 %v210_v3 }
   0xc   :  { %191 = vmatprep.subr.bf16.mxu0 %v211_v4 }
   0xf   :  { %192 = vmatpush3.bf16.msra.mxu0 %v211_v4 }
  0x10   :  { %193 = vmatprep.subr.bf16.mxu0 %v212_v9 }
  0x13   :  { %194 = vmatpush3.bf16.msra.mxu0 %v212_v9 }
  0x14   :  { %195 = vmatprep.subr.bf16.mxu0 %v213_v10 }
  0x17   :  { %196 = vmatpush3.bf16.msra.mxu0 %v213_v10 }
  0x18   :  { %197 = vmatprep.subr.bf16.mxu0 %v214_v11 }
  0x1b   :  { %198 = vmatpush3.bf16.msra.mxu0 %v214_v11 }
  0x1c   :  { %199 = vmatprep.subr.bf16.mxu0 %v215_v12 }
  0x1f   :  { %200 = vmatpush3.bf16.msra.mxu0 %v215_v12 }
  0x22   :  { %202 = vmatmul.mubr.bf16.vlgmr.msra.gmra.mxu0 %v217_v13 }
  0x7e   :  { %v50_v14 = vpop.permute.xlu1 %49 }
  0x80   :  { %v40_v15 = vpop.permute.xlu0 %39 }
  0x84   :  { %v45_v21 = vpop.permute.xlu0 %44 }
  0xe2   :  { %v203_v16 = vpop.f32.mrf.mxu0 }
  0xe3   :  { %v153_v17 = vadd.f32 %v203_v16, %v50_v14 }
  0xe4   :  { %v144_v18 = vpop.f32.mrf.mxu0 }
  0xe5   :  { %160 = vst [vmem:[%s290_s3 + $0x10] sm:$0xff] %v153_v17  ;;  %v145_v19 = vadd.f32 %v144_v18, %v40_v15 }
  0xe6   :  { %v204_v20 = vpop.f32.mrf.mxu0 }
  0xe7   :  { %158 = vst [vmem:[%s290_s3] sm:$0xff] %v145_v19 }
  0xe8   :  { %v147_v22 = vpop.f32.mrf.mxu0 }
  0xe9   :  { %v148_v23 = vadd.f32 %v147_v22, %v45_v21 }
  0xeb   :  { %159 = vst [vmem:[%s290_s3 + $0x8] sm:$0xff] %v148_v23 }

</bundles_post_ra>
